<compile_context>
chip_gen: v7x
topology: tpu7x:2x2x1
jax: 0.10.0
libtpu: 0.0.40
codegen_flags: <defaults>
</compile_context>

<pallas_src>
import functools

import jax
import jax.numpy as jnp
from jax.experimental import pallas as pl
from jax.experimental.pallas import tpu as pltpu


def _images_per_step(n, c, hw, itemsize):
    """Images folded onto the lane axis per grid step.

    Big enough to amortize per-step overhead / tiny-DMA cost, but keep >= 2 grid
    steps so both v7x TensorCores get work (v5e/v6e have a single TC and don't care).
    """
    target_bytes = 512 * 1024
    per_image = max(c * hw * itemsize, 1)
    b = max(1, min(n, target_bytes // per_image))
    while n % b:
        b -= 1
    if n // b < 2 and n >= 2:
        b = n // 2
        while n % b:
            b -= 1
    return max(b, 1)


def _basic_block_kernel(x_ref, w1_ref, b1_ref, w2_ref, b2_ref, m_ref, out_ref,
                        *, W, L):
    """One grid step: a (C, L) slab holding B folded images, L = B*H*W lanes."""

    def conv3x3(inp, w_taps, b_col):
        # Center tap (dy=1, dx=1): zero offset, mask is all-ones -> no roll, no mask.
        acc = jnp.dot(w_taps[4], inp, preferred_element_type=jnp.float32)
        for t in (0, 1, 2, 3, 5, 6, 7, 8):
            dy, dx = divmod(t, 3)
            off = (dy - 1) * W + (dx - 1)            # static lane offset of this tap
            # out[:, j] needs inp[:, j + off]  =>  np.roll shift of -off (XLU slot);
            # the 0/1 mask realizes the zero padding and kills any roll wrap-around /
            # cross-image leakage introduced by batch folding.
            tap = pltpu.roll(inp, (-off) % L, axis=1) * m_ref[t:t + 1, :]
            acc = acc + jnp.dot(w_taps[t], tap, preferred_element_type=jnp.float32)
        return acc + b_col                           # (C, L) + (C, 1)

    x2d = x_ref[0].astype(jnp.float32)               # (C, L): conv1 input + residual
    h = jnp.maximum(conv3x3(x2d, w1_ref, b1_ref[...]), 0.0)   # stays on-chip
    y = conv3x3(h, w2_ref, b2_ref[...]) + x2d                  # residual add
    out_ref[0] = jnp.maximum(y, 0.0).astype(out_ref.dtype)     # lane-dense store


def basic_block_forward(x_nchw, w1, b1, w2, b2, *, images_per_step=None):
    """BasicBlock forward.  x_nchw: (N, C, H, W); w*: (C, C, 3, 3); b*: (C,)."""
    N, C, H, W = x_nchw.shape
    HW = H * W
    B = images_per_step or _images_per_step(
        N, C, HW, jnp.dtype(x_nchw.dtype).itemsize)
    assert N % B == 0
    G = N // B
    L = B * HW

    # (N, C, H, W) -> (G, C, B*HW): fold B images onto the lane axis.  For B == 1
    # this is a free reshape; for B > 1 it's wrapper-side layout plumbing only.
    x_folded = (x_nchw.reshape(G, B, C, HW)
                      .transpose(0, 2, 1, 3)
                      .reshape(G, C, L))

    # Per-tap weight matrices: w9[t] = w[:, :, dy, dx] with t = dy*3 + dx.
    def to_taps(w):
        return jnp.transpose(w, (2, 3, 0, 1)).reshape(9, w.shape[0], w.shape[1])

    w1t = to_taps(w1).astype(jnp.float32)
    w2t = to_taps(w2).astype(jnp.float32)
    b1c = b1.reshape(C, 1).astype(jnp.float32)
    b2c = b2.reshape(C, 1).astype(jnp.float32)

    # Per-tap validity masks (zero-padding semantics), periodic across folded images.
    yy = jnp.repeat(jnp.arange(H, dtype=jnp.int32), W)        # (HW,) row index
    xx = jnp.tile(jnp.arange(W, dtype=jnp.int32), H)          # (HW,) col index
    rows = []
    for t in range(9):
        dy, dx = divmod(t, 3)
        valid = ((yy + dy - 1 >= 0) & (yy + dy - 1 < H) &
                 (xx + dx - 1 >= 0) & (xx + dx - 1 < W))
        rows.append(valid.astype(jnp.float32))
    masks = jnp.tile(jnp.stack(rows, axis=0), (1, B))         # (9, L)

    kernel = functools.partial(_basic_block_kernel, W=W, L=L)

    out_folded = pl.pallas_call(
        kernel,
        out_shape=jax.ShapeDtypeStruct((G, C, L), x_nchw.dtype),
        grid=(G,),
        in_specs=[
            pl.BlockSpec((1, C, L), lambda g: (g, 0, 0)),     # x slab (B images)
            pl.BlockSpec((9, C, C), lambda g: (0, 0, 0)),     # w1 per-tap matrices
            pl.BlockSpec((C, 1), lambda g: (0, 0)),           # b1
            pl.BlockSpec((9, C, C), lambda g: (0, 0, 0)),     # w2 per-tap matrices
            pl.BlockSpec((C, 1), lambda g: (0, 0)),           # b2
            pl.BlockSpec((9, L), lambda g: (0, 0)),           # tap validity masks
        ],
        out_specs=pl.BlockSpec((1, C, L), lambda g: (g, 0, 0)),
        compiler_params=pltpu.CompilerParams(
            dimension_semantics=("parallel",)),
    )(x_folded, w1t, b1c, w2t, b2c, masks)

    # Unfold back to NCHW.
    return (out_folded.reshape(G, C, B, HW)
                      .transpose(0, 2, 1, 3)
                      .reshape(N, C, H, W))


# ---------------------------------------------------------------------------
# Reference (plain JAX) for sanity check
# ---------------------------------------------------------------------------
def _ref_forward(x_nchw, w1, b1, w2, b2):
    dn = jax.lax.conv_dimension_numbers(x_nchw.shape, w1.shape,
                                        ("NCHW", "OIHW", "NCHW"))

    def conv(x, w, b):
        y = jax.lax.conv_general_dilated(x, w, (1, 1), ((1, 1), (1, 1)),
                                         dimension_numbers=dn)
        return y + b.reshape(1, -1, 1, 1)

    h = jnp.maximum(conv(x_nchw, w1, b1), 0.0)
    return jnp.maximum(conv(h, w2, b2) + x_nchw, 0.0)


if __name__ == "__main__":
    # Small shapes consistent with the module (in_dim == out_dim, stride=1).
    N, C, H, W = 2, 4, 16, 16
    key = jax.random.PRNGKey(0)
    kx, k1, k2, k3, k4 = jax.random.split(key, 5)

    x = jax.random.normal(kx, (N, C, H, W), dtype=jnp.float32)
    fan_in = C * 3 * 3
    scale = (2.0 / fan_in) ** 0.5
    w1 = jax.random.normal(k1, (C, C, 3, 3), dtype=jnp.float32) * scale
    b1 = jax.random.normal(k2, (C,), dtype=jnp.float32) * 0.01
    w2 = jax.random.normal(k3, (C, C, 3, 3), dtype=jnp.float32) * scale
    b2 = jax.random.normal(k4, (C,), dtype=jnp.float32) * 0.01

    out = jax.block_until_ready(basic_block_forward(x, w1, b1, w2, b2))
    ref = _ref_forward(x, w1, b1, w2, b2)
    assert out.shape == (N, C, H, W)
    assert jnp.allclose(out, ref, atol=1e-4, rtol=1e-4)

    # Also exercise the batch-folding path (B > 1 images per grid step, 2 steps).
    x2 = jax.random.normal(jax.random.PRNGKey(1), (8, C, H, W), dtype=jnp.float32)
    out2 = jax.block_until_ready(basic_block_forward(x2, w1, b1, w2, b2))
    ref2 = _ref_forward(x2, w1, b1, w2, b2)
    assert jnp.allclose(out2, ref2, atol=1e-4, rtol=1e-4)

    print("KERNEL_OK")
</pallas_src>

<mosaic_0001>
module attributes {stable_mosaic.version = 11 : i64} {
  func.func @_basic_block_kernel(%arg0: i32, %arg1: memref<1x4x256xf32, #tpu.memory_space<vmem>>, %arg2: memref<9x4x4xf32, #tpu.memory_space<vmem>>, %arg3: memref<4x1xf32, #tpu.memory_space<vmem>>, %arg4: memref<9x4x4xf32, #tpu.memory_space<vmem>>, %arg5: memref<4x1xf32, #tpu.memory_space<vmem>>, %arg6: memref<9x256xf32, #tpu.memory_space<vmem>>, %arg7: memref<1x4x256xf32, #tpu.memory_space<vmem>>) attributes {dimension_semantics = [#tpu.dimension_semantics<parallel>], iteration_bounds = array<i64: 2>, scalar_prefetch = 0 : i64, scratch_operands = 0 : i64, tpu.core_type = #tpu.core_type<tc>, window_params = [{transform_indices = @transform_0, window_bounds = array<i64: 1, 4, 256>}, {pipeline_mode = #tpu.pipeline_mode<synchronous>, transform_indices = @transform_1, window_bounds = array<i64: 9, 4, 4>}, {pipeline_mode = #tpu.pipeline_mode<synchronous>, transform_indices = @transform_2, window_bounds = array<i64: 4, 1>}, {pipeline_mode = #tpu.pipeline_mode<synchronous>, transform_indices = @transform_3, window_bounds = array<i64: 9, 4, 4>}, {pipeline_mode = #tpu.pipeline_mode<synchronous>, transform_indices = @transform_4, window_bounds = array<i64: 4, 1>}, {pipeline_mode = #tpu.pipeline_mode<synchronous>, transform_indices = @transform_5, window_bounds = array<i64: 9, 256>}, {transform_indices = @transform_6, window_bounds = array<i64: 1, 4, 256>}]} {
    %c0 = arith.constant 0 : index
    %c0_0 = arith.constant 0 : index
    %c0_1 = arith.constant 0 : index
    %0 = vector.load %arg1[%c0, %c0_0, %c0_1] : memref<1x4x256xf32, #tpu.memory_space<vmem>>, vector<1x4x256xf32>
    %1 = vector.shape_cast %0 : vector<1x4x256xf32> to vector<4x256xf32>
    %c0_2 = arith.constant 0 : index
    %c0_3 = arith.constant 0 : index
    %2 = vector.load %arg3[%c0_2, %c0_3] : memref<4x1xf32, #tpu.memory_space<vmem>>, vector<4x1xf32>
    %c4 = arith.constant 4 : index
    %c0_4 = arith.constant 0 : index
    %c0_5 = arith.constant 0 : index
    %3 = vector.load %arg2[%c4, %c0_4, %c0_5] : memref<9x4x4xf32, #tpu.memory_space<vmem>>, vector<1x4x4xf32>
    %4 = vector.shape_cast %3 : vector<1x4x4xf32> to vector<4x4xf32>
    %cst = arith.constant dense<0.000000e+00> : vector<4x256xf32>
    %5 = tpu.matmul %4, %1, %cst {dimension_numbers = #tpu.dot_dimension_numbers<[1], [0], [0], [1], [0, 0, 1, 1], [], []>} : vector<4x4xf32>, vector<4x256xf32>, vector<4x256xf32> -> vector<4x256xf32>
    %c17_i32 = arith.constant 17 : i32
    %6 = tpu.dynamic_rotate %1 by %c17_i32 dim 1 : vector<4x256xf32>, i32 -> vector<4x256xf32>
    %c0_6 = arith.constant 0 : index
    %c0_7 = arith.constant 0 : index
    %7 = vector.load %arg6[%c0_6, %c0_7] : memref<9x256xf32, #tpu.memory_space<vmem>>, vector<1x256xf32>
    %8 = vector.broadcast %7 : vector<1x256xf32> to vector<4x256xf32>
    %9 = arith.mulf %6, %8 : vector<4x256xf32>
    %c0_8 = arith.constant 0 : index
    %c0_9 = arith.constant 0 : index
    %c0_10 = arith.constant 0 : index
    %10 = vector.load %arg2[%c0_8, %c0_9, %c0_10] : memref<9x4x4xf32, #tpu.memory_space<vmem>>, vector<1x4x4xf32>
    %11 = vector.shape_cast %10 : vector<1x4x4xf32> to vector<4x4xf32>
    %cst_11 = arith.constant dense<0.000000e+00> : vector<4x256xf32>
    %12 = tpu.matmul %11, %9, %cst_11 {dimension_numbers = #tpu.dot_dimension_numbers<[1], [0], [0], [1], [0, 0, 1, 1], [], []>} : vector<4x4xf32>, vector<4x256xf32>, vector<4x256xf32> -> vector<4x256xf32>
    %13 = arith.addf %5, %12 : vector<4x256xf32>
    %c16_i32 = arith.constant 16 : i32
    %14 = tpu.dynamic_rotate %1 by %c16_i32 dim 1 : vector<4x256xf32>, i32 -> vector<4x256xf32>
    %c1 = arith.constant 1 : index
    %c0_12 = arith.constant 0 : index
    %15 = vector.load %arg6[%c1, %c0_12] : memref<9x256xf32, #tpu.memory_space<vmem>>, vector<1x256xf32>
    %16 = vector.broadcast %15 : vector<1x256xf32> to vector<4x256xf32>
    %17 = arith.mulf %14, %16 : vector<4x256xf32>
    %c1_13 = arith.constant 1 : index
    %c0_14 = arith.constant 0 : index
    %c0_15 = arith.constant 0 : index
    %18 = vector.load %arg2[%c1_13, %c0_14, %c0_15] : memref<9x4x4xf32, #tpu.memory_space<vmem>>, vector<1x4x4xf32>
    %19 = vector.shape_cast %18 : vector<1x4x4xf32> to vector<4x4xf32>
    %cst_16 = arith.constant dense<0.000000e+00> : vector<4x256xf32>
    %20 = tpu.matmul %19, %17, %cst_16 {dimension_numbers = #tpu.dot_dimension_numbers<[1], [0], [0], [1], [0, 0, 1, 1], [], []>} : vector<4x4xf32>, vector<4x256xf32>, vector<4x256xf32> -> vector<4x256xf32>
    %21 = arith.addf %13, %20 : vector<4x256xf32>
    %c15_i32 = arith.constant 15 : i32
    %22 = tpu.dynamic_rotate %1 by %c15_i32 dim 1 : vector<4x256xf32>, i32 -> vector<4x256xf32>
    %c2 = arith.constant 2 : index
    %c0_17 = arith.constant 0 : index
    %23 = vector.load %arg6[%c2, %c0_17] : memref<9x256xf32, #tpu.memory_space<vmem>>, vector<1x256xf32>
    %24 = vector.broadcast %23 : vector<1x256xf32> to vector<4x256xf32>
    %25 = arith.mulf %22, %24 : vector<4x256xf32>
    %c2_18 = arith.constant 2 : index
    %c0_19 = arith.constant 0 : index
    %c0_20 = arith.constant 0 : index
    %26 = vector.load %arg2[%c2_18, %c0_19, %c0_20] : memref<9x4x4xf32, #tpu.memory_space<vmem>>, vector<1x4x4xf32>
    %27 = vector.shape_cast %26 : vector<1x4x4xf32> to vector<4x4xf32>
    %cst_21 = arith.constant dense<0.000000e+00> : vector<4x256xf32>
    %28 = tpu.matmul %27, %25, %cst_21 {dimension_numbers = #tpu.dot_dimension_numbers<[1], [0], [0], [1], [0, 0, 1, 1], [], []>} : vector<4x4xf32>, vector<4x256xf32>, vector<4x256xf32> -> vector<4x256xf32>
    %29 = arith.addf %21, %28 : vector<4x256xf32>
    %c1_i32 = arith.constant 1 : i32
    %30 = tpu.dynamic_rotate %1 by %c1_i32 dim 1 : vector<4x256xf32>, i32 -> vector<4x256xf32>
    %c3 = arith.constant 3 : index
    %c0_22 = arith.constant 0 : index
    %31 = vector.load %arg6[%c3, %c0_22] : memref<9x256xf32, #tpu.memory_space<vmem>>, vector<1x256xf32>
    %32 = vector.broadcast %31 : vector<1x256xf32> to vector<4x256xf32>
    %33 = arith.mulf %30, %32 : vector<4x256xf32>
    %c3_23 = arith.constant 3 : index
    %c0_24 = arith.constant 0 : index
    %c0_25 = arith.constant 0 : index
    %34 = vector.load %arg2[%c3_23, %c0_24, %c0_25] : memref<9x4x4xf32, #tpu.memory_space<vmem>>, vector<1x4x4xf32>
    %35 = vector.shape_cast %34 : vector<1x4x4xf32> to vector<4x4xf32>
    %cst_26 = arith.constant dense<0.000000e+00> : vector<4x256xf32>
    %36 = tpu.matmul %35, %33, %cst_26 {dimension_numbers = #tpu.dot_dimension_numbers<[1], [0], [0], [1], [0, 0, 1, 1], [], []>} : vector<4x4xf32>, vector<4x256xf32>, vector<4x256xf32> -> vector<4x256xf32>
    %37 = arith.addf %29, %36 : vector<4x256xf32>
    %c255_i32 = arith.constant 255 : i32
    %38 = tpu.dynamic_rotate %1 by %c255_i32 dim 1 : vector<4x256xf32>, i32 -> vector<4x256xf32>
    %c5 = arith.constant 5 : index
    %c0_27 = arith.constant 0 : index
    %39 = vector.load %arg6[%c5, %c0_27] : memref<9x256xf32, #tpu.memory_space<vmem>>, vector<1x256xf32>
    %40 = vector.broadcast %39 : vector<1x256xf32> to vector<4x256xf32>
    %41 = arith.mulf %38, %40 : vector<4x256xf32>
    %c5_28 = arith.constant 5 : index
    %c0_29 = arith.constant 0 : index
    %c0_30 = arith.constant 0 : index
    %42 = vector.load %arg2[%c5_28, %c0_29, %c0_30] : memref<9x4x4xf32, #tpu.memory_space<vmem>>, vector<1x4x4xf32>
    %43 = vector.shape_cast %42 : vector<1x4x4xf32> to vector<4x4xf32>
    %cst_31 = arith.constant dense<0.000000e+00> : vector<4x256xf32>
    %44 = tpu.matmul %43, %41, %cst_31 {dimension_numbers = #tpu.dot_dimension_numbers<[1], [0], [0], [1], [0, 0, 1, 1], [], []>} : vector<4x4xf32>, vector<4x256xf32>, vector<4x256xf32> -> vector<4x256xf32>
    %45 = arith.addf %37, %44 : vector<4x256xf32>
    %c241_i32 = arith.constant 241 : i32
    %46 = tpu.dynamic_rotate %1 by %c241_i32 dim 1 : vector<4x256xf32>, i32 -> vector<4x256xf32>
    %c6 = arith.constant 6 : index
    %c0_32 = arith.constant 0 : index
    %47 = vector.load %arg6[%c6, %c0_32] : memref<9x256xf32, #tpu.memory_space<vmem>>, vector<1x256xf32>
    %48 = vector.broadcast %47 : vector<1x256xf32> to vector<4x256xf32>
    %49 = arith.mulf %46, %48 : vector<4x256xf32>
    %c6_33 = arith.constant 6 : index
    %c0_34 = arith.constant 0 : index
    %c0_35 = arith.constant 0 : index
    %50 = vector.load %arg2[%c6_33, %c0_34, %c0_35] : memref<9x4x4xf32, #tpu.memory_space<vmem>>, vector<1x4x4xf32>
    %51 = vector.shape_cast %50 : vector<1x4x4xf32> to vector<4x4xf32>
    %cst_36 = arith.constant dense<0.000000e+00> : vector<4x256xf32>
    %52 = tpu.matmul %51, %49, %cst_36 {dimension_numbers = #tpu.dot_dimension_numbers<[1], [0], [0], [1], [0, 0, 1, 1], [], []>} : vector<4x4xf32>, vector<4x256xf32>, vector<4x256xf32> -> vector<4x256xf32>
    %53 = arith.addf %45, %52 : vector<4x256xf32>
    %c240_i32 = arith.constant 240 : i32
    %54 = tpu.dynamic_rotate %1 by %c240_i32 dim 1 : vector<4x256xf32>, i32 -> vector<4x256xf32>
    %c7 = arith.constant 7 : index
    %c0_37 = arith.constant 0 : index
    %55 = vector.load %arg6[%c7, %c0_37] : memref<9x256xf32, #tpu.memory_space<vmem>>, vector<1x256xf32>
    %56 = vector.broadcast %55 : vector<1x256xf32> to vector<4x256xf32>
    %57 = arith.mulf %54, %56 : vector<4x256xf32>
    %c7_38 = arith.constant 7 : index
    %c0_39 = arith.constant 0 : index
    %c0_40 = arith.constant 0 : index
    %58 = vector.load %arg2[%c7_38, %c0_39, %c0_40] : memref<9x4x4xf32, #tpu.memory_space<vmem>>, vector<1x4x4xf32>
    %59 = vector.shape_cast %58 : vector<1x4x4xf32> to vector<4x4xf32>
    %cst_41 = arith.constant dense<0.000000e+00> : vector<4x256xf32>
    %60 = tpu.matmul %59, %57, %cst_41 {dimension_numbers = #tpu.dot_dimension_numbers<[1], [0], [0], [1], [0, 0, 1, 1], [], []>} : vector<4x4xf32>, vector<4x256xf32>, vector<4x256xf32> -> vector<4x256xf32>
    %61 = arith.addf %53, %60 : vector<4x256xf32>
    %c239_i32 = arith.constant 239 : i32
    %62 = tpu.dynamic_rotate %1 by %c239_i32 dim 1 : vector<4x256xf32>, i32 -> vector<4x256xf32>
    %c8 = arith.constant 8 : index
    %c0_42 = arith.constant 0 : index
    %63 = vector.load %arg6[%c8, %c0_42] : memref<9x256xf32, #tpu.memory_space<vmem>>, vector<1x256xf32>
    %64 = vector.broadcast %63 : vector<1x256xf32> to vector<4x256xf32>
    %65 = arith.mulf %62, %64 : vector<4x256xf32>
    %c8_43 = arith.constant 8 : index
    %c0_44 = arith.constant 0 : index
    %c0_45 = arith.constant 0 : index
    %66 = vector.load %arg2[%c8_43, %c0_44, %c0_45] : memref<9x4x4xf32, #tpu.memory_space<vmem>>, vector<1x4x4xf32>
    %67 = vector.shape_cast %66 : vector<1x4x4xf32> to vector<4x4xf32>
    %cst_46 = arith.constant dense<0.000000e+00> : vector<4x256xf32>
    %68 = tpu.matmul %67, %65, %cst_46 {dimension_numbers = #tpu.dot_dimension_numbers<[1], [0], [0], [1], [0, 0, 1, 1], [], []>} : vector<4x4xf32>, vector<4x256xf32>, vector<4x256xf32> -> vector<4x256xf32>
    %69 = arith.addf %61, %68 : vector<4x256xf32>
    %70 = vector.broadcast %2 : vector<4x1xf32> to vector<4x256xf32>
    %71 = arith.addf %69, %70 : vector<4x256xf32>
    %cst_47 = arith.constant 0.000000e+00 : f32
    %72 = vector.broadcast %cst_47 : f32 to vector<4x256xf32>
    %73 = arith.maximumf %71, %72 : vector<4x256xf32>
    %c0_48 = arith.constant 0 : index
    %c0_49 = arith.constant 0 : index
    %74 = vector.load %arg5[%c0_48, %c0_49] : memref<4x1xf32, #tpu.memory_space<vmem>>, vector<4x1xf32>
    %c4_50 = arith.constant 4 : index
    %c0_51 = arith.constant 0 : index
    %c0_52 = arith.constant 0 : index
    %75 = vector.load %arg4[%c4_50, %c0_51, %c0_52] : memref<9x4x4xf32, #tpu.memory_space<vmem>>, vector<1x4x4xf32>
    %76 = vector.shape_cast %75 : vector<1x4x4xf32> to vector<4x4xf32>
    %cst_53 = arith.constant dense<0.000000e+00> : vector<4x256xf32>
    %77 = tpu.matmul %76, %73, %cst_53 {dimension_numbers = #tpu.dot_dimension_numbers<[1], [0], [0], [1], [0, 0, 1, 1], [], []>} : vector<4x4xf32>, vector<4x256xf32>, vector<4x256xf32> -> vector<4x256xf32>
    %c17_i32_54 = arith.constant 17 : i32
    %78 = tpu.dynamic_rotate %73 by %c17_i32_54 dim 1 : vector<4x256xf32>, i32 -> vector<4x256xf32>
    %c0_55 = arith.constant 0 : index
    %c0_56 = arith.constant 0 : index
    %79 = vector.load %arg6[%c0_55, %c0_56] : memref<9x256xf32, #tpu.memory_space<vmem>>, vector<1x256xf32>
    %80 = vector.broadcast %79 : vector<1x256xf32> to vector<4x256xf32>
    %81 = arith.mulf %78, %80 : vector<4x256xf32>
    %c0_57 = arith.constant 0 : index
    %c0_58 = arith.constant 0 : index
    %c0_59 = arith.constant 0 : index
    %82 = vector.load %arg4[%c0_57, %c0_58, %c0_59] : memref<9x4x4xf32, #tpu.memory_space<vmem>>, vector<1x4x4xf32>
    %83 = vector.shape_cast %82 : vector<1x4x4xf32> to vector<4x4xf32>
    %cst_60 = arith.constant dense<0.000000e+00> : vector<4x256xf32>
    %84 = tpu.matmul %83, %81, %cst_60 {dimension_numbers = #tpu.dot_dimension_numbers<[1], [0], [0], [1], [0, 0, 1, 1], [], []>} : vector<4x4xf32>, vector<4x256xf32>, vector<4x256xf32> -> vector<4x256xf32>
    %85 = arith.addf %77, %84 : vector<4x256xf32>
    %c16_i32_61 = arith.constant 16 : i32
    %86 = tpu.dynamic_rotate %73 by %c16_i32_61 dim 1 : vector<4x256xf32>, i32 -> vector<4x256xf32>
    %c1_62 = arith.constant 1 : index
    %c0_63 = arith.constant 0 : index
    %87 = vector.load %arg6[%c1_62, %c0_63] : memref<9x256xf32, #tpu.memory_space<vmem>>, vector<1x256xf32>
    %88 = vector.broadcast %87 : vector<1x256xf32> to vector<4x256xf32>
    %89 = arith.mulf %86, %88 : vector<4x256xf32>
    %c1_64 = arith.constant 1 : index
    %c0_65 = arith.constant 0 : index
    %c0_66 = arith.constant 0 : index
    %90 = vector.load %arg4[%c1_64, %c0_65, %c0_66] : memref<9x4x4xf32, #tpu.memory_space<vmem>>, vector<1x4x4xf32>
    %91 = vector.shape_cast %90 : vector<1x4x4xf32> to vector<4x4xf32>
    %cst_67 = arith.constant dense<0.000000e+00> : vector<4x256xf32>
    %92 = tpu.matmul %91, %89, %cst_67 {dimension_numbers = #tpu.dot_dimension_numbers<[1], [0], [0], [1], [0, 0, 1, 1], [], []>} : vector<4x4xf32>, vector<4x256xf32>, vector<4x256xf32> -> vector<4x256xf32>
    %93 = arith.addf %85, %92 : vector<4x256xf32>
    %c15_i32_68 = arith.constant 15 : i32
    %94 = tpu.dynamic_rotate %73 by %c15_i32_68 dim 1 : vector<4x256xf32>, i32 -> vector<4x256xf32>
    %c2_69 = arith.constant 2 : index
    %c0_70 = arith.constant 0 : index
    %95 = vector.load %arg6[%c2_69, %c0_70] : memref<9x256xf32, #tpu.memory_space<vmem>>, vector<1x256xf32>
    %96 = vector.broadcast %95 : vector<1x256xf32> to vector<4x256xf32>
    %97 = arith.mulf %94, %96 : vector<4x256xf32>
    %c2_71 = arith.constant 2 : index
    %c0_72 = arith.constant 0 : index
    %c0_73 = arith.constant 0 : index
    %98 = vector.load %arg4[%c2_71, %c0_72, %c0_73] : memref<9x4x4xf32, #tpu.memory_space<vmem>>, vector<1x4x4xf32>
    %99 = vector.shape_cast %98 : vector<1x4x4xf32> to vector<4x4xf32>
    %cst_74 = arith.constant dense<0.000000e+00> : vector<4x256xf32>
    %100 = tpu.matmul %99, %97, %cst_74 {dimension_numbers = #tpu.dot_dimension_numbers<[1], [0], [0], [1], [0, 0, 1, 1], [], []>} : vector<4x4xf32>, vector<4x256xf32>, vector<4x256xf32> -> vector<4x256xf32>
    %101 = arith.addf %93, %100 : vector<4x256xf32>
    %c1_i32_75 = arith.constant 1 : i32
    %102 = tpu.dynamic_rotate %73 by %c1_i32_75 dim 1 : vector<4x256xf32>, i32 -> vector<4x256xf32>
    %c3_76 = arith.constant 3 : index
    %c0_77 = arith.constant 0 : index
    %103 = vector.load %arg6[%c3_76, %c0_77] : memref<9x256xf32, #tpu.memory_space<vmem>>, vector<1x256xf32>
    %104 = vector.broadcast %103 : vector<1x256xf32> to vector<4x256xf32>
    %105 = arith.mulf %102, %104 : vector<4x256xf32>
    %c3_78 = arith.constant 3 : index
    %c0_79 = arith.constant 0 : index
    %c0_80 = arith.constant 0 : index
    %106 = vector.load %arg4[%c3_78, %c0_79, %c0_80] : memref<9x4x4xf32, #tpu.memory_space<vmem>>, vector<1x4x4xf32>
    %107 = vector.shape_cast %106 : vector<1x4x4xf32> to vector<4x4xf32>
    %cst_81 = arith.constant dense<0.000000e+00> : vector<4x256xf32>
    %108 = tpu.matmul %107, %105, %cst_81 {dimension_numbers = #tpu.dot_dimension_numbers<[1], [0], [0], [1], [0, 0, 1, 1], [], []>} : vector<4x4xf32>, vector<4x256xf32>, vector<4x256xf32> -> vector<4x256xf32>
    %109 = arith.addf %101, %108 : vector<4x256xf32>
    %c255_i32_82 = arith.constant 255 : i32
    %110 = tpu.dynamic_rotate %73 by %c255_i32_82 dim 1 : vector<4x256xf32>, i32 -> vector<4x256xf32>
    %c5_83 = arith.constant 5 : index
    %c0_84 = arith.constant 0 : index
    %111 = vector.load %arg6[%c5_83, %c0_84] : memref<9x256xf32, #tpu.memory_space<vmem>>, vector<1x256xf32>
    %112 = vector.broadcast %111 : vector<1x256xf32> to vector<4x256xf32>
    %113 = arith.mulf %110, %112 : vector<4x256xf32>
    %c5_85 = arith.constant 5 : index
    %c0_86 = arith.constant 0 : index
    %c0_87 = arith.constant 0 : index
    %114 = vector.load %arg4[%c5_85, %c0_86, %c0_87] : memref<9x4x4xf32, #tpu.memory_space<vmem>>, vector<1x4x4xf32>
    %115 = vector.shape_cast %114 : vector<1x4x4xf32> to vector<4x4xf32>
    %cst_88 = arith.constant dense<0.000000e+00> : vector<4x256xf32>
    %116 = tpu.matmul %115, %113, %cst_88 {dimension_numbers = #tpu.dot_dimension_numbers<[1], [0], [0], [1], [0, 0, 1, 1], [], []>} : vector<4x4xf32>, vector<4x256xf32>, vector<4x256xf32> -> vector<4x256xf32>
    %117 = arith.addf %109, %116 : vector<4x256xf32>
    %c241_i32_89 = arith.constant 241 : i32
    %118 = tpu.dynamic_rotate %73 by %c241_i32_89 dim 1 : vector<4x256xf32>, i32 -> vector<4x256xf32>
    %c6_90 = arith.constant 6 : index
    %c0_91 = arith.constant 0 : index
    %119 = vector.load %arg6[%c6_90, %c0_91] : memref<9x256xf32, #tpu.memory_space<vmem>>, vector<1x256xf32>
    %120 = vector.broadcast %119 : vector<1x256xf32> to vector<4x256xf32>
    %121 = arith.mulf %118, %120 : vector<4x256xf32>
    %c6_92 = arith.constant 6 : index
    %c0_93 = arith.constant 0 : index
    %c0_94 = arith.constant 0 : index
    %122 = vector.load %arg4[%c6_92, %c0_93, %c0_94] : memref<9x4x4xf32, #tpu.memory_space<vmem>>, vector<1x4x4xf32>
    %123 = vector.shape_cast %122 : vector<1x4x4xf32> to vector<4x4xf32>
    %cst_95 = arith.constant dense<0.000000e+00> : vector<4x256xf32>
    %124 = tpu.matmul %123, %121, %cst_95 {dimension_numbers = #tpu.dot_dimension_numbers<[1], [0], [0], [1], [0, 0, 1, 1], [], []>} : vector<4x4xf32>, vector<4x256xf32>, vector<4x256xf32> -> vector<4x256xf32>
    %125 = arith.addf %117, %124 : vector<4x256xf32>
    %c240_i32_96 = arith.constant 240 : i32
    %126 = tpu.dynamic_rotate %73 by %c240_i32_96 dim 1 : vector<4x256xf32>, i32 -> vector<4x256xf32>
    %c7_97 = arith.constant 7 : index
    %c0_98 = arith.constant 0 : index
    %127 = vector.load %arg6[%c7_97, %c0_98] : memref<9x256xf32, #tpu.memory_space<vmem>>, vector<1x256xf32>
    %128 = vector.broadcast %127 : vector<1x256xf32> to vector<4x256xf32>
    %129 = arith.mulf %126, %128 : vector<4x256xf32>
    %c7_99 = arith.constant 7 : index
    %c0_100 = arith.constant 0 : index
    %c0_101 = arith.constant 0 : index
    %130 = vector.load %arg4[%c7_99, %c0_100, %c0_101] : memref<9x4x4xf32, #tpu.memory_space<vmem>>, vector<1x4x4xf32>
    %131 = vector.shape_cast %130 : vector<1x4x4xf32> to vector<4x4xf32>
    %cst_102 = arith.constant dense<0.000000e+00> : vector<4x256xf32>
    %132 = tpu.matmul %131, %129, %cst_102 {dimension_numbers = #tpu.dot_dimension_numbers<[1], [0], [0], [1], [0, 0, 1, 1], [], []>} : vector<4x4xf32>, vector<4x256xf32>, vector<4x256xf32> -> vector<4x256xf32>
    %133 = arith.addf %125, %132 : vector<4x256xf32>
    %c239_i32_103 = arith.constant 239 : i32
    %134 = tpu.dynamic_rotate %73 by %c239_i32_103 dim 1 : vector<4x256xf32>, i32 -> vector<4x256xf32>
    %c8_104 = arith.constant 8 : index
    %c0_105 = arith.constant 0 : index
    %135 = vector.load %arg6[%c8_104, %c0_105] : memref<9x256xf32, #tpu.memory_space<vmem>>, vector<1x256xf32>
    %136 = vector.broadcast %135 : vector<1x256xf32> to vector<4x256xf32>
    %137 = arith.mulf %134, %136 : vector<4x256xf32>
    %c8_106 = arith.constant 8 : index
    %c0_107 = arith.constant 0 : index
    %c0_108 = arith.constant 0 : index
    %138 = vector.load %arg4[%c8_106, %c0_107, %c0_108] : memref<9x4x4xf32, #tpu.memory_space<vmem>>, vector<1x4x4xf32>
    %139 = vector.shape_cast %138 : vector<1x4x4xf32> to vector<4x4xf32>
    %cst_109 = arith.constant dense<0.000000e+00> : vector<4x256xf32>
    %140 = tpu.matmul %139, %137, %cst_109 {dimension_numbers = #tpu.dot_dimension_numbers<[1], [0], [0], [1], [0, 0, 1, 1], [], []>} : vector<4x4xf32>, vector<4x256xf32>, vector<4x256xf32> -> vector<4x256xf32>
    %141 = arith.addf %133, %140 : vector<4x256xf32>
    %142 = vector.broadcast %74 : vector<4x1xf32> to vector<4x256xf32>
    %143 = arith.addf %141, %142 : vector<4x256xf32>
    %144 = arith.addf %143, %1 : vector<4x256xf32>
    %cst_110 = arith.constant 0.000000e+00 : f32
    %145 = vector.broadcast %cst_110 : f32 to vector<4x256xf32>
    %146 = arith.maximumf %144, %145 : vector<4x256xf32>
    %c0_111 = arith.constant 0 : index
    %c0_112 = arith.constant 0 : index
    %c0_113 = arith.constant 0 : index
    %147 = vector.load %arg7[%c0_111, %c0_112, %c0_113] : memref<1x4x256xf32, #tpu.memory_space<vmem>>, vector<1x4x256xf32>
    %148 = vector.shape_cast %147 : vector<1x4x256xf32> to vector<4x256xf32>
    %149 = vector.shape_cast %146 : vector<4x256xf32> to vector<1x4x256xf32>
    tpu.vector_store %arg7[%c0_111, %c0_112, %c0_113], %149 {strides = array<i32>} : memref<1x4x256xf32, #tpu.memory_space<vmem>>, vector<1x4x256xf32>,
    return
  }
  func.func @transform_0(%arg0: i32) -> (i32, i32, i32) {
    %c0_i32 = arith.constant 0 : i32
    %c0_i32_0 = arith.constant 0 : i32
    %c0_i32_1 = arith.constant 0 : i32
    return %arg0, %c0_i32, %c0_i32_0 : i32, i32, i32
  }
  func.func @transform_1(%arg0: i32) -> (i32, i32, i32) {
    %c0_i32 = arith.constant 0 : i32
    %c0_i32_0 = arith.constant 0 : i32
    %c0_i32_1 = arith.constant 0 : i32
    %c0_i32_2 = arith.constant 0 : i32
    return %c0_i32, %c0_i32_0, %c0_i32_1 : i32, i32, i32
  }
  func.func @transform_2(%arg0: i32) -> (i32, i32) {
    %c0_i32 = arith.constant 0 : i32
    %c0_i32_0 = arith.constant 0 : i32
    %c0_i32_1 = arith.constant 0 : i32
    return %c0_i32, %c0_i32_0 : i32, i32
  }
  func.func @transform_3(%arg0: i32) -> (i32, i32, i32) {
    %c0_i32 = arith.constant 0 : i32
    %c0_i32_0 = arith.constant 0 : i32
    %c0_i32_1 = arith.constant 0 : i32
    %c0_i32_2 = arith.constant 0 : i32
    return %c0_i32, %c0_i32_0, %c0_i32_1 : i32, i32, i32
  }
  func.func @transform_4(%arg0: i32) -> (i32, i32) {
    %c0_i32 = arith.constant 0 : i32
    %c0_i32_0 = arith.constant 0 : i32
    %c0_i32_1 = arith.constant 0 : i32
    return %c0_i32, %c0_i32_0 : i32, i32
  }
  func.func @transform_5(%arg0: i32) -> (i32, i32) {
    %c0_i32 = arith.constant 0 : i32
    %c0_i32_0 = arith.constant 0 : i32
    %c0_i32_1 = arith.constant 0 : i32
    return %c0_i32, %c0_i32_0 : i32, i32
  }
  func.func @transform_6(%arg0: i32) -> (i32, i32, i32) {
    %c0_i32 = arith.constant 0 : i32
    %c0_i32_0 = arith.constant 0 : i32
    %c0_i32_1 = arith.constant 0 : i32
    return %arg0, %c0_i32, %c0_i32_0 : i32, i32, i32
  }
}

</mosaic_0001>

<bundles_post_ra>
// kernel: tpu_custom_call.1
= control target key start
LH: loop header
LB: loop body
LE: loop exit
PB: predicated region body
PF: predicated region fallthrough
CT: control target
= control target key end

     0   :  { %11 = vsyncpa [#allocation3], 0  ;;  %s2854_s0 = inlined_call_operand.vmem [shape: f32[2,4,256], index: 0, kind: input, shape index: {}]   ;;  %s2855_s1 = inlined_call_operand.vmem [shape: f32[9,4,4], index: 1, kind: input, shape index: {}]   ;;  %s2856_s2 = inlined_call_operand.vmem [shape: f32[4,1], index: 2, kind: input, shape index: {}]   ;;  %s2857_s3 = inlined_call_operand.vmem [shape: f32[9,4,4], index: 3, kind: input, shape index: {}]   ;;  %s2858_s4 = inlined_call_operand.vmem [shape: f32[4,1], index: 4, kind: input, shape index: {}]   ;;  %s2859_s5 = inlined_call_operand.vmem [shape: f32[9,256], index: 5, kind: input, shape index: {}]   ;;  %s2860_s6 = inlined_call_operand.hbm [shape: f32[2,4,256], index: 6, kind: output, shape index: {}]  }
   0x1   :  { %13 = vsyncpa [#allocation3 + $0x1], 0  ;;  %s2382_s21 = smov 0   ;;  %s2384_s22 = smov 0  }
   0x2   :  { %s2386_s23 = smov 0   ;;  %s2388_s24 = smov 0  }
   0x3 LB: > { %s2403_s25 = sadd.s32 4294967295, %s2334_s24   ;;  %s2098_s26 = sadd.s32 4294967294, %s2334_s24   ;;  %s2334_s24 = sphi %s2388_s24, %s2866_s24   ;;  %s2330_s23 = sphi %s2386_s23, %s2865_s23   ;;  %s2326_s22 = sphi %s2384_s22, %s2864_s22   ;;  %s2322_s21 = sphi %s2382_s21, %s2863_s21  }
   0x4   : > { %s2407_s27 = sadd.s32 1, %s2334_s24   ;;  %s157_s28 = sadd.s32 1, %s2330_s23 }
   0x5   : > { %s154_s29 = ssub.s32 %s2334_s24, %s2407_s27  ;;  %p167_p0 = scmp.ne.s32.totalorder %s2330_s23, %s2326_s22 }
   0x6   : > { %p155_p1 = scmp.eq.s32.totalorder %s154_s29, 0  ;;  %p168_p2 = scmp.eq.s32.totalorder %s2403_s25, 1 }
   0x7   : > { %p173_p3 = scmp.ne.s32.totalorder %s2326_s22, %s2322_s21  ;;  %p174_p4 = scmp.eq.s32.totalorder %s2098_s26, 1 }
   0x8   : > { %s2418_s30 = scalar_select %p155_p1, %s2330_s23, %s157_s28  }
   0x9   : > { %p2420_p5 = por %p168_p2, %p167_p0  ;;  %p2424_p6 = por %p174_p4, %p173_p3 }
   0xa   : > { %p2101_p7 = scmp.ge.s32.totalorder %s2334_s24, 1  ;;  %p215_p8 = scmp.lt.s32.totalorder %s2334_s24, 3 }
   0xc   : > { %p216_p9 = pnand %p2101_p7, %p215_p8 }
   0xd   : > { %p245_p10 = scmp.lt.s32.totalorder (!%p216_p9), %s2403_s25, 1  ;;  %v2336_v0 = vmov (!%p216_p9), 0.0   ;;  %s2337_s14 = smov (!%p216_p9), 17   ;;  %v251_v3 = vld [vmem:[%s2856_s2] sm:$0xf] (!%p216_p9)  ;;  %v2345_v4 = vmov (!%p216_p9), 0   ;;  %v261_v5 = vlaneseq (!%p216_p9) }
   0xe   : > { %219 = sbr.rel (%p216_p9) target bundleno = 853 (0x355), region = 44  ;;  %356 = vmatprep.mubr.f32.mxu0 (!%p216_p9), %v2336_v0  ;;  %1277 = vmatprep.mubr.f32.mxu1 (!%p216_p9), %v2336_v0  ;;  %s2338_s15 = smov (!%p216_p9), 16   ;;  %v266_v10 = vld [vmem:[%s2859_s5] ss:$8 sm:$0x3] (!%p216_p9)  ;;  %vm285_vm2 = vcmask (!%p216_p9), 1043456  }
   0xf   : > { %s2339_s16 = smov (!%p216_p9), 15   ;;  %s2340_s17 = smov (!%p216_p9), 1   ;;  %2270 = vset.pattern.permute.xlu0 (!%p216_p9), %v2345_v4  ;;  %v269_v6 = vshrl.u32 (!%p216_p9), %v261_v5, 7  ;;  %v2478_v7 = vand.u32 (!%p216_p9), 127, %v261_v5  ;;  %v280_v24 = vld [vmem:[%s2855_s1] sm:$0xf] (!%p216_p9) }
  0x10   : > { %s2341_s18 = smov (!%p216_p9), 127   ;;  %s2342_s19 = smov (!%p216_p9), 113   ;;  %v2112_v13 = vld [vmem:[%s2859_s5 + $0x1] ss:$8 sm:$0x3] (!%p216_p9)  ;;  %vm281_vm3 = vcmask (!%p216_p9), 31744  }
  0x11   : > { %s2343_s20 = smov (!%p216_p9), 112   ;;  %s2344_s26 = smov (!%p216_p9), 111   ;;  %v2480_v8 = vsub.s32 (!%p216_p9), 0, %v269_v6  ;;  %v2482_v9 = vsub.s32 (!%p216_p9), 1, %v269_v6  ;;  %vm263_vm0 = vcmp.lt.s32.totalorder (!%p216_p9), %v2478_v7, 17  ;;  %vm445_vm1 = vcmp.lt.s32.totalorder (!%p216_p9), %v2478_v7, 16 }
  0x12   : > { %v2117_v26 = vld [vmem:[%s2859_s5 + $0x2] ss:$8 sm:$0x3] (!%p216_p9)  ;;  %vm551_vm4 = vcmp.lt.s32.totalorder (!%p216_p9), %v2478_v7, 15  ;;  %v2105_v34 = vld [vmem:[%s2855_s1 + $0x10] sm:$0xf] (!%p216_p9) }
  0x13   : > { %v2492_v14 = vrot.slane (!%p216_p9), %v266_v10, %v2480_v8  ;;  %v2495_v15 = vrot.slane (!%p216_p9), %v266_v10, %v2482_v9  ;;  %v2499_v17 = vrot.slane (!%p216_p9), %v2112_v13, %v2482_v9  ;;  %v2523_v29 = vrot.slane (!%p216_p9), %v2112_v13, %v2480_v8  ;;  %v2122_v36 = vld [vmem:[%s2859_s5 + $0x3] ss:$8 sm:$0x3] (!%p216_p9)  ;;  %v2113_v44 = vld [vmem:[%s2855_s1 + $0x4] sm:$0xf] (!%p216_p9) }
  0x14   : > { %v2532_v31 = vrot.slane (!%p216_p9), %v2117_v26, %v2482_v9  ;;  %vm657_vm5 = vcmp.lt.s32.totalorder (!%p216_p9), %v2478_v7, 1  ;;  %v2548_v39 = vrot.slane (!%p216_p9), %v2117_v26, %v2480_v8  ;;  %v2555_v41 = vrot.slane (!%p216_p9), %v2122_v36, %v2482_v9  ;;  %v2127_v46 = vld [vmem:[%s2859_s5 + $0x5] ss:$8 sm:$0x3] (!%p216_p9)  ;;  %v2118_v54 = vld [vmem:[%s2855_s1 + $0x8] sm:$0xf] (!%p216_p9) }
  0x15   : > { %s246_s9 = scalar_select %p245_p10, %s2403_s25, 1  ;;  %vm763_vm6 = vcmp.lt.s32.totalorder %v2478_v7, 127  ;;  %v2571_v49 = vrot.slane %v2122_v36, %v2480_v8  ;;  %v2578_v51 = vrot.slane %v2127_v46, %v2482_v9  ;;  %v2132_v56 = vld [vmem:[%s2859_s5 + $0x6] ss:$8 sm:$0x3]  ;;  %vm869_vm7 = vcmp.lt.s32.totalorder %v2478_v7, 113 }
  0x16   : > { %v2594_v59 = vrot.slane %v2127_v46, %v2480_v8  ;;  %v2601_v61 = vrot.slane %v2132_v56, %v2482_v9  ;;  %v2137_v5 = vld [vmem:[%s2859_s5 + $0x7] ss:$8 sm:$0x3]  ;;  %vm975_vm8 = vcmp.lt.s32.totalorder %v2478_v7, 112  ;;  %vm1081_vm9 = vcmp.lt.s32.totalorder %v2478_v7, 111 }
  0x17   : > { %s2187_s10 = sshll.u32 %s246_s9, 3  ;;  %v2624_v13 = vrot.slane %v2137_v5, %v2482_v9 }
  0x18   : > { %s249_s13 = scalar_lea.vmem %s2854_s0, %s2187_s10 }
  0x19   : > { %v2437_v1 = vld [vmem:[%s249_s13] sm:$0xff] }
  0x1a   : > { %257 = vrot.lane.b32.xlu0 %v2437_v1, %s2337_s14  ;;  %v2443_v2 = vcombine.high %v2437_v1, %v2437_v1  ;;  %441 = vrot.lane.b32.xlu1 %v2437_v1, %s2338_s15 }
  0x1e   : > { %259 = vrot.lane.b32.xlu0 %v2443_v2, %s2337_s14  ;;  %443 = vrot.lane.b32.xlu1 %v2443_v2, %s2338_s15 }
  0x22   : > { %549 = vrot.lane.b32.xlu1 %v2443_v2, %s2339_s16  ;;  %547 = vrot.lane.b32.xlu0 %v2437_v1, %s2339_s16 }
  0x26   : > { %655 = vrot.lane.b32.xlu1 %v2443_v2, %s2340_s17  ;;  %653 = vrot.lane.b32.xlu0 %v2437_v1, %s2340_s17 }
  0x2a   : > { %761 = vrot.lane.b32.xlu1 %v2443_v2, %s2341_s18  ;;  %759 = vrot.lane.b32.xlu0 %v2437_v1, %s2341_s18 }
  0x2e   : > { %867 = vrot.lane.b32.xlu1 %v2443_v2, %s2342_s19  ;;  %865 = vrot.lane.b32.xlu0 %v2437_v1, %s2342_s19 }
  0x32   : > { %973 = vrot.lane.b32.xlu1 %v2443_v2, %s2343_s20  ;;  %971 = vrot.lane.b32.xlu0 %v2437_v1, %s2343_s20 }
  0x36   : > { %1079 = vrot.lane.b32.xlu1 %v2443_v2, %s2344_s26  ;;  %1077 = vrot.lane.b32.xlu0 %v2437_v1, %s2344_s26 }
  0x3a   : > { %1185 = vperm.xlu0 %2270, %v251_v3   ;;  %v2123_v3 = vld [vmem:[%s2855_s1 + $0xc] sm:$0xf] }
  0x8c   : > { %v258_v11 = vpop.permute.xlu0 %257  ;;  %v442_v12 = vpop.permute.xlu1 %441 }
  0x90   : > { %v260_v16 = vpop.permute.xlu0 %259  ;;  %v444_v18 = vpop.permute.xlu1 %443 }
  0x91   : > { %v264_v19 = vsel %vm263_vm0, %v258_v11, %v260_v16  ;;  %v265_v20 = vsel %vm263_vm0, %v260_v16, %v258_v11  ;;  %v446_v21 = vsel %vm445_vm1, %v442_v12, %v444_v18  ;;  %v447_v30 = vsel %vm445_vm1, %v444_v18, %v442_v12 }
  0x92   : > { %v278_v22 = vmul.f32 %v2492_v14, %v265_v20  ;;  %v279_v23 = vmul.f32 %v2495_v15, %v264_v19  ;;  %v462_v25 = vmul.f32 %v2499_v17, %v446_v21  ;;  %v461_v33 = vmul.f32 %v2523_v29, %v447_v30  ;;  %v2128_v19 = vld [vmem:[%s2855_s1 + $0x14] sm:$0xf]  ;;  %v2142_v21 = vld [vmem:[%s2859_s5 + $0x10] ss:$8 sm:$0x3] }
  0x93   : > { %v2617_v11 = vrot.slane %v2132_v56, %v2480_v8  ;;  %v2647_v26 = vrot.slane %v2142_v21, %v2482_v9  ;;  %v2133_v30 = vld [vmem:[%s2855_s1 + $0x18] sm:$0xf] }
  0x94   : > { %2106 = vmatprep.subr.msk.mxu0 %vm285_vm2, %v279_v23  ;;  %v550_v27 = vpop.permute.xlu1 %549  ;;  %v548_v28 = vpop.permute.xlu0 %547 }
  0x95   : > { %2107 = vmatpush1.msk.msra.mxu0 %vm285_vm2, %v278_v22  ;;  %v552_v32 = vsel %vm551_vm4, %v548_v28, %v550_v27  ;;  %v553_v40 = vsel %vm551_vm4, %v550_v27, %v548_v28 }
  0x96   : > { %2108 = vmatmul.mubr.msk.f32.vlgmr.msra.gmra.mrb[0].mxu0 %vm281_vm3, %v280_v24  ;;  %2109 = vmatprep.subr.msk.mxu0 %vm285_vm2, %v2443_v2  ;;  %v568_v35 = vmul.f32 %v2532_v31, %v552_v32  ;;  %v567_v43 = vmul.f32 %v2548_v39, %v553_v40  ;;  %v2640_v24 = vrot.slane %v2137_v5, %v2480_v8 }
  0x97   : > { %2110 = vmatpush1.msk.msra.mxu0 %vm285_vm2, %v2437_v1  ;;  %434 = vmatprep.mubr.f32.mxu0 %v2336_v0 }
  0x98   : > { %2114 = vmatprep.subr.msk.mxu0 %vm285_vm2, %v462_v25  ;;  %v656_v37 = vpop.permute.xlu1 %655  ;;  %v654_v38 = vpop.permute.xlu0 %653 }
  0x99   : > { %v658_v42 = vsel %vm657_vm5, %v654_v38, %v656_v37  ;;  %v659_v50 = vsel %vm657_vm5, %v656_v37, %v654_v38 }
  0x9a   : > { %v674_v45 = vmul.f32 %v2555_v41, %v658_v42  ;;  %v673_v53 = vmul.f32 %v2571_v49, %v659_v50 }
  0x9c   : > { %v762_v47 = vpop.permute.xlu1 %761  ;;  %v760_v48 = vpop.permute.xlu0 %759 }
  0x9d   : > { %v765_v52 = vsel %vm763_vm6, %v762_v47, %v760_v48  ;;  %v764_v60 = vsel %vm763_vm6, %v760_v48, %v762_v47 }
  0x9e   : > { %2111 = vmatmul.mubr.msk.f32.vlgmr.msra.gmra.mrb[0].mxu0 %vm281_vm3, %v2105_v34  ;;  %v780_v55 = vmul.f32 %v2578_v51, %v765_v52  ;;  %v779_v63 = vmul.f32 %v2594_v59, %v764_v60 }
  0x9f   : > { %2115 = vmatpush1.msk.msra.mxu0 %vm285_vm2, %v461_v33  ;;  %538 = vmatprep.mubr.f32.mxu0 %v2336_v0  ;;  %v2659_v33 = vrot.slane %v2142_v21, %v2480_v8  ;;  %v2143_v8 = vld [vmem:[%s2855_s1 + $0x20] sm:$0xf] }
  0xa0   : > { %2119 = vmatprep.subr.msk.mxu0 %vm285_vm2, %v568_v35  ;;  %v868_v57 = vpop.permute.xlu1 %867  ;;  %v866_v58 = vpop.permute.xlu0 %865  ;;  %v2138_v35 = vld [vmem:[%s2855_s1 + $0x1c] sm:$0xf] }
  0xa1   : > { %v871_v62 = vsel %vm869_vm7, %v868_v57, %v866_v58  ;;  %v870_v12 = vsel %vm869_vm7, %v866_v58, %v868_v57 }
  0xa2   : > { %v886_v4 = vmul.f32 %v2601_v61, %v871_v62  ;;  %v885_v18 = vmul.f32 %v2617_v11, %v870_v12 }
  0xa4   : > { %v974_v6 = vpop.permute.xlu1 %973  ;;  %v972_v10 = vpop.permute.xlu0 %971 }
  0xa5   : > { %v977_v16 = vsel %vm975_vm8, %v974_v6, %v972_v10  ;;  %v976_v25 = vsel %vm975_vm8, %v972_v10, %v974_v6 }
  0xa6   : > { %2116 = vmatmul.mubr.msk.f32.vlgmr.msra.gmra.mrb[0].mxu0 %vm281_vm3, %v2113_v44  ;;  %v992_v20 = vmul.f32 %v2624_v13, %v977_v16  ;;  %v991_v28 = vmul.f32 %v2640_v24, %v976_v25 }
  0xa7   : > { %2120 = vmatpush1.msk.msra.mxu0 %vm285_vm2, %v567_v43  ;;  %644 = vmatprep.mubr.f32.mxu0 %v2336_v0 }
  0xa8   : > { %2124 = vmatprep.subr.msk.mxu0 %vm285_vm2, %v674_v45  ;;  %v1080_v22 = vpop.permute.xlu1 %1079  ;;  %v1078_v23 = vpop.permute.xlu0 %1077  ;;  %v1192_v45 = vld [vmem:[%s2858_s4] sm:$0xf] }
  0xa9   : > { %v1083_v27 = vsel %vm1081_vm9, %v1080_v22, %v1078_v23  ;;  %v1082_v9 = vsel %vm1081_vm9, %v1078_v23, %v1080_v22 }
  0xaa   : > { %v1098_v32 = vmul.f32 %v2647_v26, %v1083_v27  ;;  %v1097_v34 = vmul.f32 %v2659_v33, %v1082_v9 }
  0xae   : > { %2121 = vmatmul.mubr.msk.f32.vlgmr.msra.gmra.mrb[0].mxu0 %vm281_vm3, %v2118_v54  ;;  %v1203_v54 = vld [vmem:[%s2857_s3] sm:$0xf] }
  0xaf   : > { %2125 = vmatpush1.msk.msra.mxu0 %vm285_vm2, %v673_v53  ;;  %750 = vmatprep.mubr.f32.mxu0 %v2336_v0 }
  0xb0   : > { %2129 = vmatprep.subr.msk.mxu0 %vm285_vm2, %v780_v55 }
  0xb6   : > { %2126 = vmatmul.mubr.msk.f32.vlgmr.msra.gmra.mrb[0].mxu0 %vm281_vm3, %v2123_v3 }
  0xb7   : > { %2130 = vmatpush1.msk.msra.mxu0 %vm285_vm2, %v779_v63  ;;  %856 = vmatprep.mubr.f32.mxu0 %v2336_v0 }
  0xb8   : > { %2134 = vmatprep.subr.msk.mxu0 %vm285_vm2, %v886_v4 }
  0xb9   : > { %v1186_v36 = vpop.permute.xlu0 %1185 }
  0xbe   : > { %2131 = vmatmul.mubr.msk.f32.vlgmr.msra.gmra.mrb[0].mxu0 %vm281_vm3, %v2128_v19 }
  0xbf   : > { %2135 = vmatpush1.msk.msra.mxu0 %vm285_vm2, %v885_v18  ;;  %962 = vmatprep.mubr.f32.mxu0 %v2336_v0 }
  0xc0   : > { %2139 = vmatprep.subr.msk.mxu0 %vm285_vm2, %v992_v20 }
  0xc6   : > { %2136 = vmatmul.mubr.msk.f32.vlgmr.msra.gmra.mrb[0].mxu0 %vm281_vm3, %v2133_v30 }
  0xc7   : > { %2140 = vmatpush1.msk.msra.mxu0 %vm285_vm2, %v991_v28  ;;  %1068 = vmatprep.mubr.f32.mxu0 %v2336_v0 }
  0xc8   : > { %2144 = vmatprep.subr.msk.mxu0 %vm285_vm2, %v1098_v32 }
  0xce   : > { %2141 = vmatmul.mubr.msk.f32.vlgmr.msra.gmra.mrb[0].mxu0 %vm281_vm3, %v2138_v35 }
  0xcf   : > { %2145 = vmatpush1.msk.msra.mxu0 %vm285_vm2, %v1097_v34  ;;  %1174 = vmatprep.mubr.f32.mxu0 %v2336_v0 }
  0xd6   : > { %2146 = vmatmul.mubr.msk.f32.vlgmr.msra.gmra.mrb[0].mxu0 %vm281_vm3, %v2143_v8 }
 0x1a9   : > { %v1176_v37 = vpop.f32.mrb[0].mxu0 }
 0x1aa   : > { %v1188_v38 = vadd.f32 %v1186_v36, %v1176_v37  ;;  %v1178_v40 = vpop.f32.mrb[1].mxu0 }
 0x1ab   : > { %v1189_v43 = vadd.f32 %v1186_v36, %v1178_v40 }
 0x1ac   : > { %v1190_v42 = vmax.f32 %v1188_v38, 0.0 }
 0x1ad   : > { %v1191_v44 = vmax.f32 %v1189_v43, 0.0  ;;  %v2174_v43 = vld [vmem:[%s2857_s3 + $0x1c] sm:$0xf] }
 0x1ae   : > { %1364 = vrot.lane.b32.xlu0 %v1190_v42, %s2338_s15  ;;  %1195 = vrot.lane.b32.xlu1 %v1190_v42, %s2337_s14 }
 0x1b2   : > { %1456 = vrot.lane.b32.xlu0 %v1190_v42, %s2339_s16  ;;  %1197 = vrot.lane.b32.xlu1 %v1191_v44, %s2337_s14 }
 0x1b6   : > { %1548 = vrot.lane.b32.xlu0 %v1190_v42, %s2340_s17  ;;  %1366 = vrot.lane.b32.xlu1 %v1191_v44, %s2338_s15 }
 0x1ba   : > { %1640 = vrot.lane.b32.xlu0 %v1190_v42, %s2341_s18  ;;  %1458 = vrot.lane.b32.xlu1 %v1191_v44, %s2339_s16 }
 0x1be   : > { %1732 = vrot.lane.b32.xlu0 %v1190_v42, %s2342_s19  ;;  %1550 = vrot.lane.b32.xlu1 %v1191_v44, %s2340_s17 }
 0x1c2   : > { %1824 = vrot.lane.b32.xlu0 %v1190_v42, %s2343_s20  ;;  %1642 = vrot.lane.b32.xlu1 %v1191_v44, %s2341_s18  ;;  %s242_s18 = sand.u32 1, %s2326_s22  }
 0x1c3   : > { %s2025_s13 = scalar_lea.sflag [#allocation3], %s242_s18 }
 0x1c6   : > { %1916 = vrot.lane.b32.xlu0 %v1190_v42, %s2344_s26  ;;  %1734 = vrot.lane.b32.xlu1 %v1191_v44, %s2342_s19  ;;  %s2102_s19 = sshll.u32 %s242_s18, 3 }
 0x1ca   : > { %2010 = vperm.xlu0 %2270, %v1192_v45   ;;  %1826 = vrot.lane.b32.xlu1 %v1191_v44, %s2343_s20  ;;  %s2188_s20 = sshll.u32 %s2403_s25, 7  ;;  %s2346_s25 = smov [#allocation2]  }
 0x1cb   : > { %s2812_s12 = scalar_lea.hbm %s2860_s6, %s2188_s20  ;;  %s2276_s14 = sshll.u32 %s2346_s25, 4  ;;  %s2277_s14 = int_to_ptr.vmem [resolvable:$false] %s2276_s14 }
 0x1cc   : > { %s2278_s29 = scalar_lea.vmem %s2277_s14, 256 }
 0x1ce   : > { %1918 = vrot.lane.b32.xlu1 %v1191_v44, %s2344_s26  ;;  %s244_s26 = scalar_lea.vmem [#allocation2], %s2102_s19 }
 0x1cf   : > { %s2039_s9 = sshll.u32 %s244_s26, 4  ;;  %s2814_s9 = int_to_ptr.vmem [resolvable:$true] %s2039_s9 }
 0x1d0   : > { %s2272_s28 = scalar_lea.vmem %s2814_s9, 128  ;;  %p2279_p0 = scmp.lt.s32.totalorder %s2814_s9, %s2277_s14 }
 0x1d1   : > { %p2273_p11 = scmp.ne.s32.totalorder %s2814_s9, %s2272_s28  ;;  %p2280_p1 = scmp.lt.s32.totalorder %s2278_s29, %s2272_s28 }
 0x1d3   : > { %p2274_p12 = pnand %p2273_p11, %p2420_p5  ;;  %p2281_p2 = por %p2280_p1, %p2279_p0 }
 0x1d5   : > { %p2275_p13 = pneg %p2274_p12 }
 0x1d7   : > { %p2282_p3 = pnand %p2281_p2, %p2275_p13 }
 0x220   : > { %v1196_v46 = vpop.permute.xlu1 %1195  ;;  %v1365_v55 = vpop.permute.xlu0 %1364 }
 0x224   : > { %v1198_v47 = vpop.permute.xlu1 %1197 }
 0x225   : > { %v1199_v48 = vsel %vm263_vm0, %v1196_v46, %v1198_v47  ;;  %v1200_v50 = vsel %vm263_vm0, %v1198_v47, %v1196_v46 }
 0x226   : > { %v1201_v52 = vmul.f32 %v1200_v50, %v2492_v14  ;;  %v1202_v53 = vmul.f32 %v1199_v48, %v2495_v15  ;;  %v1457_v15 = vpop.permute.xlu0 %1456 }
 0x228   : > { %2148 = vmatprep.subr.msk.mxu1 %vm285_vm2, %v1202_v53  ;;  %v1367_v56 = vpop.permute.xlu1 %1366 }
 0x229   : > { %v1368_v57 = vsel %vm445_vm1, %v1365_v55, %v1367_v56  ;;  %2149 = vmatpush1.msk.msra.mxu1 %vm285_vm2, %v1201_v52  ;;  %v1369_v60 = vsel %vm445_vm1, %v1367_v56, %v1365_v55 }
 0x22a   : > { %v1371_v58 = vmul.f32 %v1368_v57, %v2499_v17  ;;  %2150 = vmatmul.mubr.msk.f32.vlgmr.msra.gmra.mrb[0].mxu1 %vm281_vm3, %v1203_v54  ;;  %2151 = vmatprep.subr.msk.mxu1 %vm285_vm2, %v1191_v44  ;;  %v2147_v17 = vld [vmem:[%s2857_s3 + $0x10] sm:$0xf]  ;;  %v1370_v63 = vmul.f32 %v1369_v60, %v2523_v29  ;;  %v1549_v5 = vpop.permute.xlu0 %1548  ;;  %v2154_v29 = vld [vmem:[%s2857_s3 + $0x4] sm:$0xf] }
 0x22b   : > { %2152 = vmatpush1.msk.msra.mxu1 %vm285_vm2, %v1190_v42  ;;  %1357 = vmatprep.mubr.f32.mxu1 %v2336_v0 }
 0x22c   : > { %2155 = vmatprep.subr.msk.mxu1 %vm285_vm2, %v1371_v58  ;;  %v1459_v14 = vpop.permute.xlu1 %1458 }
 0x22d   : > { %v1460_v62 = vsel %vm551_vm4, %v1457_v15, %v1459_v14  ;;  %v1461_v6 = vsel %vm551_vm4, %v1459_v14, %v1457_v15 }
 0x22e   : > { %v1463_v3 = vmul.f32 %v1460_v62, %v2532_v31  ;;  %v1462_v31 = vmul.f32 %v1461_v6, %v2548_v39  ;;  %v1641_v18 = vpop.permute.xlu0 %1640  ;;  %v2158_v39 = vld [vmem:[%s2857_s3 + $0x8] sm:$0xf] }
 0x230   : > { %v1551_v4 = vpop.permute.xlu1 %1550 }
 0x231   : > { %v1552_v10 = vsel %vm657_vm5, %v1549_v5, %v1551_v4  ;;  %v1553_v19 = vsel %vm657_vm5, %v1551_v4, %v1549_v5 }
 0x232   : > { %2153 = vmatmul.mubr.msk.f32.vlgmr.msra.gmra.mrb[0].mxu1 %vm281_vm3, %v2147_v17  ;;  %v1555_v12 = vmul.f32 %v1552_v10, %v2555_v41  ;;  %v1554_v41 = vmul.f32 %v1553_v19, %v2571_v49  ;;  %v1733_v23 = vpop.permute.xlu0 %1732  ;;  %v2162_v49 = vld [vmem:[%s2857_s3 + $0xc] sm:$0xf] }
 0x233   : > { %2156 = vmatpush1.msk.msra.mxu1 %vm285_vm2, %v1370_v63  ;;  %1447 = vmatprep.mubr.f32.mxu1 %v2336_v0 }
 0x234   : > { %2159 = vmatprep.subr.msk.mxu1 %vm285_vm2, %v1463_v3  ;;  %v1643_v16 = vpop.permute.xlu1 %1642 }
 0x235   : > { %v1645_v20 = vsel %vm763_vm6, %v1643_v16, %v1641_v18  ;;  %v1644_v25 = vsel %vm763_vm6, %v1641_v18, %v1643_v16 }
 0x236   : > { %v1647_v21 = vmul.f32 %v1645_v20, %v2578_v51  ;;  %v1646_v51 = vmul.f32 %v1644_v25, %v2594_v59  ;;  %v1825_v32 = vpop.permute.xlu0 %1824  ;;  %v2166_v59 = vld [vmem:[%s2857_s3 + $0x14] sm:$0xf] }
 0x238   : > { %v1735_v22 = vpop.permute.xlu1 %1734 }
 0x239   : > { %v1737_v27 = vsel %vm869_vm7, %v1735_v22, %v1733_v23  ;;  %v1736_v9 = vsel %vm869_vm7, %v1733_v23, %v1735_v22 }
 0x23a   : > { %2157 = vmatmul.mubr.msk.f32.vlgmr.msra.gmra.mrb[0].mxu1 %vm281_vm3, %v2154_v29  ;;  %v1739_v28 = vmul.f32 %v1737_v27, %v2601_v61  ;;  %v1738_v61 = vmul.f32 %v1736_v9, %v2617_v11  ;;  %v1917_v36 = vpop.permute.xlu0 %1916  ;;  %v2170_v11 = vld [vmem:[%s2857_s3 + $0x18] sm:$0xf] }
 0x23b   : > { %2160 = vmatpush1.msk.msra.mxu1 %vm285_vm2, %v1462_v31  ;;  %1539 = vmatprep.mubr.f32.mxu1 %v2336_v0 }
 0x23c   : > { %2163 = vmatprep.subr.msk.mxu1 %vm285_vm2, %v1555_v12  ;;  %v1827_v30 = vpop.permute.xlu1 %1826 }
 0x23d   : > { %v1829_v34 = vsel %vm975_vm8, %v1827_v30, %v1825_v32  ;;  %v1828_v37 = vsel %vm975_vm8, %v1825_v32, %v1827_v30 }
 0x23e   : > { %v1831_v35 = vmul.f32 %v1829_v34, %v2624_v13  ;;  %v1830_v13 = vmul.f32 %v1828_v37, %v2640_v24  ;;  %v2178_v24 = vld [vmem:[%s2857_s3 + $0x20] sm:$0xf] }
 0x240   : > { %v1919_v8 = vpop.permute.xlu1 %1918 }
 0x241   : > { %v1921_v38 = vsel %vm1081_vm9, %v1919_v8, %v1917_v36  ;;  %v1920_v42 = vsel %vm1081_vm9, %v1917_v36, %v1919_v8 }
 0x242   : > { %2161 = vmatmul.mubr.msk.f32.vlgmr.msra.gmra.mrb[0].mxu1 %vm281_vm3, %v2158_v39  ;;  %v1923_v40 = vmul.f32 %v1921_v38, %v2647_v26  ;;  %v1922_v44 = vmul.f32 %v1920_v42, %v2659_v33 }
 0x243   : > { %2164 = vmatpush1.msk.msra.mxu1 %vm285_vm2, %v1554_v41  ;;  %1631 = vmatprep.mubr.f32.mxu1 %v2336_v0 }
 0x244   : > { %2167 = vmatprep.subr.msk.mxu1 %vm285_vm2, %v1647_v21 }
 0x249   : > { %v2011_v7 = vpop.permute.xlu0 %2010 }
 0x24a   : > { %2165 = vmatmul.mubr.msk.f32.vlgmr.msra.gmra.mrb[0].mxu1 %vm281_vm3, %v2162_v49 }
 0x24b   : > { %2168 = vmatpush1.msk.msra.mxu1 %vm285_vm2, %v1646_v51  ;;  %1723 = vmatprep.mubr.f32.mxu1 %v2336_v0 }
 0x24c   : > { %2171 = vmatprep.subr.msk.mxu1 %vm285_vm2, %v1739_v28 }
 0x252   : > { %2169 = vmatmul.mubr.msk.f32.vlgmr.msra.gmra.mrb[0].mxu1 %vm281_vm3, %v2166_v59 }
 0x253   : > { %2172 = vmatpush1.msk.msra.mxu1 %vm285_vm2, %v1738_v61  ;;  %1815 = vmatprep.mubr.f32.mxu1 %v2336_v0 }
 0x254   : > { %2175 = vmatprep.subr.msk.mxu1 %vm285_vm2, %v1831_v35 }
 0x25a   : > { %2173 = vmatmul.mubr.msk.f32.vlgmr.msra.gmra.mrb[0].mxu1 %vm281_vm3, %v2170_v11 }
 0x25b   : > { %2176 = vmatpush1.msk.msra.mxu1 %vm285_vm2, %v1830_v13  ;;  %1907 = vmatprep.mubr.f32.mxu1 %v2336_v0 }
 0x25c   : > { %2179 = vmatprep.subr.msk.mxu1 %vm285_vm2, %v1923_v40 }
 0x262   : > { %2177 = vmatmul.mubr.msk.f32.vlgmr.msra.gmra.mrb[0].mxu1 %vm281_vm3, %v2174_v43 }
 0x263   : > { %2180 = vmatpush1.msk.msra.mxu1 %vm285_vm2, %v1922_v44  ;;  %1999 = vmatprep.mubr.f32.mxu1 %v2336_v0 }
 0x26a   : > { %2181 = vmatmul.mubr.msk.f32.vlgmr.msra.gmra.mrb[0].mxu1 %vm281_vm3, %v2178_v24 }
 0x33d   : > { %v2001_v26 = vpop.f32.mrb[0].mxu1 }
 0x33e   : > { %v2013_v45 = vadd.f32 %v2011_v7, %v2001_v26  ;;  %v2003_v46 = vpop.f32.mrb[1].mxu1 }
 0x33f   : > { %v2014_v33 = vadd.f32 %v2011_v7, %v2003_v46 }
 0x340   : > { %v2015_v47 = vadd.f32 %v2013_v45, %v2437_v1 }
 0x341   : > { %v2016_v48 = vadd.f32 %v2014_v33, %v2443_v2 }
 0x342   : > { %v2017_v50 = vmax.f32 %v2015_v47, 0.0 }
 0x343   : > { %v2018_v0 = vmax.f32 %v2016_v48, 0.0 }
 0x345   : > { %v2021_v52 = vcombine.low %v2017_v50, %v2018_v0 }
 0x347   : > { %2023 = vst [vmem:[%s244_s26] sm:$0xff] %v2021_v52 }
 0x348   : > { %2285 = shalt.err (!%p2282_p3)
}
 0x349   : > { %s2286_s15 = scalar_lea.hbm %s2812_s12, 128  ;;  %s2290_s18 = scalar_lea.hbm %s2860_s6, 256 }
 0x34a   : > { %p2287_p4 = scmp.ne.s32.totalorder %s2812_s12, %s2286_s15  ;;  %p2291_p9 = scmp.lt.u32.totalorder %s2812_s12, %s2860_s6 }
 0x34b   : > { %p2292_p10 = scmp.lt.u32.totalorder %s2290_s18, %s2286_s15  ;;  %p2294_p12 = scmp.lt.u32.totalorder %s2286_s15, %s2812_s12 }
 0x34c   : > { %p2288_p7 = pnand %p2287_p4, %p2420_p5 }
 0x34d   : > { %p2293_p11 = por %p2292_p10, %p2291_p9 }
 0x34e   : > { %p2289_p8 = pneg %p2288_p7 }
 0x34f   : > { %p2295_p13 = por %p2294_p12, %p2293_p11 }
 0x351   : > { %p2296_p0 = pnand %p2295_p13, %p2289_p8 }
 0x353   : > { %2299 = shalt.err (!%p2296_p0)
}
 0x354   : > { %2221 = dma.vmem_to_hbm [thread:$0]  (%p2420_p5), %s2814_s9, 128, %s2812_s12, %s2025_s13  }
 0x355 PF: > { %p2227_p1 = scmp.ge.s32.totalorder %s2334_s24, 2  ;;  %s2051_s26 = sand.u32 1, %s2322_s21  }
 0x356   : > { %s2052_s10 = scalar_lea.sflag [#allocation3], %s2051_s26 }
 0x357   : > { %p2224_p2 = pnand %p2227_p1, %p2424_p6 }
 0x359   : > { %2317 = dma.done.wait (!%p2224_p2), %s2052_s10, 128  }
 0x35a   : > { %2319 = vsyncadd (!%p2224_p2), %s2052_s10, 4294967168  ;;  %p16_p3 = scmp.ge.s32.totalorder %s2407_s27, 4   ;;  %s2863_s21 = smov %s2326_s22 }
 0x35b   : > { %s2864_s22 = smov %s2330_s23  ;;  %s2865_s23 = smov %s2418_s30 }
 0x35c   : > { %s2866_s24 = smov %s2407_s27  ;;  %18 = sbr.rel (!%p16_p3) target bundleno = 3 (0x3), region = 102 }
 0x363   :  { %2057 = vsyncpa [#allocation3], 1 }
 0x364   :  { %2059 = vsyncpa [#allocation3 + $0x1], 1 }

</bundles_post_ra>
